<compile_context>
chip_gen: v6e
topology: v6e:2x2x1
jax: 0.10.0
libtpu: 0.0.40
codegen_flags: <defaults>
</compile_context>

<pallas_src>
import jax
import jax.numpy as jnp
from jax import lax
from jax.experimental import pallas as pl
from jax.experimental.pallas import tpu as pltpu

BN_EPS = 1e-5


def fused_kernel(x_ref, w1t_ref, b1_ref, gamma_ref, beta_ref, w2t_ref, b2_ref,
                 o_ref):
    # x_ref:   (C, M) f32 activations (channels on sublanes, pixels on lanes)
    # w1t_ref: (C_in, C_out, 1) f32   -- w1 transposed, one column per page
    # w2t_ref: (C_in, C_out, 1) f32
    # b1/gamma/beta/b2: (C, 1) f32    -- broadcast along lanes
    # o_ref:   (C, M) f32 output
    c, m = x_ref.shape
    inv_m = 1.0 / m

    x = x_ref[...]                                   # (C, M)
    w1t = w1t_ref[...]                               # (C, C, 1)
    w2t = w2t_ref[...]

    # ---- Conv1 (pointwise channel mix): sum of rank-1 whole-block FMAs.
    #   y[co, m] = sum_ci w1[co, ci] * x[ci, m] + b1[co]
    y = w1t[0] * x[0:1, :]                           # (C,1)*(1,M) -> (C,M)
    for ci in range(1, c):
        y = y + w1t[ci] * x[ci:ci + 1, :]
    y = y + b1_ref[...]

    # ---- BatchNorm3d (training mode: biased batch stats over N*D*H*W) + ReLU
    # One fused reduction pass: per-channel sum and sum-of-squares.
    s1 = jnp.sum(y, axis=-1, keepdims=True)          # (C,1)
    s2 = jnp.sum(y * y, axis=-1, keepdims=True)      # (C,1)
    mean = s1 * inv_m
    var = jnp.maximum(s2 * inv_m - mean * mean, 0.0)
    scale = lax.rsqrt(var + BN_EPS) * gamma_ref[...]   # fold gamma into scale
    r = jnp.maximum((y - mean) * scale + beta_ref[...], 0.0)   # BN + ReLU

    # ---- Conv2 (pointwise channel mix) + Sigmoid
    z = w2t[0] * r[0:1, :]
    for ci in range(1, c):
        z = z + w2t[ci] * r[ci:ci + 1, :]
    z = z + b2_ref[...]
    # numerically robust sigmoid: 0.5 * (tanh(z/2) + 1)  (EUP, no inf temp)
    o_ref[...] = 0.5 * (jnp.tanh(0.5 * z) + 1.0)


def model_forward(x_ncdhw, params):
    """x_ncdhw: (N, C, D, H, W) float32. Matches the PyTorch module's forward
    in training mode (BatchNorm3d uses batch statistics)."""
    n, c, d, h, w = x_ncdhw.shape
    m = n * d * h * w
    w1, b1, gamma, beta, w2, b2 = params

    # Channels-first flatten: for N == 1 this is a pure reshape (no transpose).
    if n == 1:
        x_cm = x_ncdhw.reshape(c, m)
    else:
        x_cm = jnp.transpose(x_ncdhw, (1, 0, 2, 3, 4)).reshape(c, m)

    # (C_out, C_in) -> (C_in, C_out, 1): page ci holds the output-channel
    # column for input channel ci (rank-1 FMA form inside the kernel).
    w1t = jnp.transpose(w1)[:, :, None].astype(jnp.float32)
    w2t = jnp.transpose(w2)[:, :, None].astype(jnp.float32)
    col = lambda v: v.reshape(c, 1).astype(jnp.float32)

    vmem_spec = pl.BlockSpec(memory_space=pltpu.MemorySpace.VMEM)
    out_cm = pl.pallas_call(
        fused_kernel,
        out_shape=jax.ShapeDtypeStruct((c, m), jnp.float32),
        in_specs=[vmem_spec] * 7,
        out_specs=vmem_spec,
    )(x_cm, w1t, col(b1), col(gamma), col(beta), w2t, col(b2))

    # (C, M) -> NCDHW. Pure reshape for N == 1.
    if n == 1:
        return out_cm.reshape(n, c, d, h, w)
    return jnp.transpose(out_cm.reshape(c, n, d, h, w), (1, 0, 2, 3, 4))


def reference_forward(x_ncdhw, params):
    """Pure-JAX reference (training-mode BatchNorm3d), for validation."""
    w1, b1, gamma, beta, w2, b2 = params
    y = jnp.einsum('oc,ncdhw->nodhw', w1, x_ncdhw) + b1[None, :, None, None, None]
    mean = jnp.mean(y, axis=(0, 2, 3, 4), keepdims=True)
    var = jnp.mean((y - mean) ** 2, axis=(0, 2, 3, 4), keepdims=True)
    yn = (y - mean) * lax.rsqrt(var + BN_EPS)
    yn = yn * gamma[None, :, None, None, None] + beta[None, :, None, None, None]
    r = jnp.maximum(yn, 0.0)
    z = jnp.einsum('oc,ncdhw->nodhw', w2, r) + b2[None, :, None, None, None]
    return jax.nn.sigmoid(z)


def init_params(key, c=3):
    k1, k2, k3, k4, k5, k6 = jax.random.split(key, 6)
    # Conv3d weight shape is (C_out, C_in, 1, 1, 1); we keep the (C_out, C_in)
    # slice since the kernel is pointwise.
    w1 = jax.random.normal(k1, (c, c), jnp.float32) * 0.5
    b1 = jax.random.normal(k2, (c,), jnp.float32) * 0.1
    gamma = 1.0 + 0.1 * jax.random.normal(k3, (c,), jnp.float32)
    beta = 0.1 * jax.random.normal(k4, (c,), jnp.float32)
    w2 = jax.random.normal(k5, (c, c), jnp.float32) * 0.5
    b2 = jax.random.normal(k6, (c,), jnp.float32) * 0.1
    return (w1, b1, gamma, beta, w2, b2)


if __name__ == "__main__":
    key = jax.random.PRNGKey(0)
    kx, kp = jax.random.split(key)

    # Same shape as the PyTorch test program: (1, 3, 3, 3, 3) NCDHW
    x = jax.random.normal(kx, (1, 3, 3, 3, 3), jnp.float32)
    params = init_params(kp, c=3)

    out = jax.block_until_ready(model_forward(x, params))

    assert out.shape == (1, 3, 3, 3, 3)
    assert bool(jnp.all(jnp.isfinite(out)))
    assert bool(jnp.all((out >= 0.0) & (out <= 1.0)))  # sigmoid output range

    ref = jax.block_until_ready(reference_forward(x, params))
    assert bool(jnp.allclose(out, ref, atol=2e-5, rtol=1e-4))

    print("KERNEL_OK")
</pallas_src>

<mosaic_0001>
module attributes {stable_mosaic.version = 11 : i64} {
  func.func @fused_kernel(%arg0: memref<3x27xf32, #tpu.memory_space<vmem>>, %arg1: memref<3x3x1xf32, #tpu.memory_space<vmem>>, %arg2: memref<3x1xf32, #tpu.memory_space<vmem>>, %arg3: memref<3x1xf32, #tpu.memory_space<vmem>>, %arg4: memref<3x1xf32, #tpu.memory_space<vmem>>, %arg5: memref<3x3x1xf32, #tpu.memory_space<vmem>>, %arg6: memref<3x1xf32, #tpu.memory_space<vmem>>, %arg7: memref<3x27xf32, #tpu.memory_space<vmem>>) attributes {dimension_semantics = [], scalar_prefetch = 0 : i64, scratch_operands = 0 : i64, tpu.core_type = #tpu.core_type<tc>} {
    %c0 = arith.constant 0 : index
    %c0_0 = arith.constant 0 : index
    %0 = vector.load %arg0[%c0, %c0_0] : memref<3x27xf32, #tpu.memory_space<vmem>>, vector<3x27xf32>
    %c0_1 = arith.constant 0 : index
    %c0_2 = arith.constant 0 : index
    %c0_3 = arith.constant 0 : index
    %1 = vector.load %arg1[%c0_1, %c0_2, %c0_3] : memref<3x3x1xf32, #tpu.memory_space<vmem>>, vector<3x3x1xf32>
    %c0_4 = arith.constant 0 : index
    %c0_5 = arith.constant 0 : index
    %c0_6 = arith.constant 0 : index
    %2 = vector.load %arg5[%c0_4, %c0_5, %c0_6] : memref<3x3x1xf32, #tpu.memory_space<vmem>>, vector<3x3x1xf32>
    %3 = vector.extract_strided_slice %1 {offsets = [0, 0, 0], sizes = [1, 3, 1], strides = [1, 1, 1]} : vector<3x3x1xf32> to vector<1x3x1xf32>
    %4 = vector.shape_cast %3 : vector<1x3x1xf32> to vector<3x1xf32>
    %5 = vector.extract_strided_slice %0 {offsets = [0, 0], sizes = [1, 27], strides = [1, 1]} : vector<3x27xf32> to vector<1x27xf32>
    %6 = vector.broadcast %4 : vector<3x1xf32> to vector<3x27xf32>
    %7 = vector.broadcast %5 : vector<1x27xf32> to vector<3x27xf32>
    %8 = arith.mulf %6, %7 : vector<3x27xf32>
    %9 = vector.extract_strided_slice %1 {offsets = [1, 0, 0], sizes = [1, 3, 1], strides = [1, 1, 1]} : vector<3x3x1xf32> to vector<1x3x1xf32>
    %10 = vector.shape_cast %9 : vector<1x3x1xf32> to vector<3x1xf32>
    %11 = vector.extract_strided_slice %0 {offsets = [1, 0], sizes = [1, 27], strides = [1, 1]} : vector<3x27xf32> to vector<1x27xf32>
    %12 = vector.broadcast %10 : vector<3x1xf32> to vector<3x27xf32>
    %13 = vector.broadcast %11 : vector<1x27xf32> to vector<3x27xf32>
    %14 = arith.mulf %12, %13 : vector<3x27xf32>
    %15 = arith.addf %8, %14 : vector<3x27xf32>
    %16 = vector.extract_strided_slice %1 {offsets = [2, 0, 0], sizes = [1, 3, 1], strides = [1, 1, 1]} : vector<3x3x1xf32> to vector<1x3x1xf32>
    %17 = vector.shape_cast %16 : vector<1x3x1xf32> to vector<3x1xf32>
    %18 = vector.extract_strided_slice %0 {offsets = [2, 0], sizes = [1, 27], strides = [1, 1]} : vector<3x27xf32> to vector<1x27xf32>
    %19 = vector.broadcast %17 : vector<3x1xf32> to vector<3x27xf32>
    %20 = vector.broadcast %18 : vector<1x27xf32> to vector<3x27xf32>
    %21 = arith.mulf %19, %20 : vector<3x27xf32>
    %22 = arith.addf %15, %21 : vector<3x27xf32>
    %c0_7 = arith.constant 0 : index
    %c0_8 = arith.constant 0 : index
    %23 = vector.load %arg2[%c0_7, %c0_8] : memref<3x1xf32, #tpu.memory_space<vmem>>, vector<3x1xf32>
    %24 = vector.broadcast %23 : vector<3x1xf32> to vector<3x27xf32>
    %25 = arith.addf %22, %24 : vector<3x27xf32>
    %cst = arith.constant dense<0.000000e+00> : vector<3xf32>
    %26 = vector.multi_reduction <add>, %25, %cst [1] : vector<3x27xf32> to vector<3xf32>
    %27 = vector.shape_cast %26 : vector<3xf32> to vector<3x1xf32>
    %28 = arith.mulf %25, %25 : vector<3x27xf32>
    %cst_9 = arith.constant dense<0.000000e+00> : vector<3xf32>
    %29 = vector.multi_reduction <add>, %28, %cst_9 [1] : vector<3x27xf32> to vector<3xf32>
    %30 = vector.shape_cast %29 : vector<3xf32> to vector<3x1xf32>
    %cst_10 = arith.constant 0.0370370373 : f32
    %31 = vector.broadcast %cst_10 : f32 to vector<3x1xf32>
    %32 = arith.mulf %27, %31 : vector<3x1xf32>
    %cst_11 = arith.constant 0.0370370373 : f32
    %33 = vector.broadcast %cst_11 : f32 to vector<3x1xf32>
    %34 = arith.mulf %30, %33 : vector<3x1xf32>
    %35 = arith.mulf %32, %32 : vector<3x1xf32>
    %36 = arith.subf %34, %35 : vector<3x1xf32>
    %cst_12 = arith.constant 0.000000e+00 : f32
    %37 = vector.broadcast %cst_12 : f32 to vector<3x1xf32>
    %38 = arith.maximumf %36, %37 : vector<3x1xf32>
    %cst_13 = arith.constant 9.99999974E-6 : f32
    %39 = vector.broadcast %cst_13 : f32 to vector<3x1xf32>
    %40 = arith.addf %38, %39 : vector<3x1xf32>
    %41 = math.rsqrt %40 : vector<3x1xf32>
    %c0_14 = arith.constant 0 : index
    %c0_15 = arith.constant 0 : index
    %42 = vector.load %arg3[%c0_14, %c0_15] : memref<3x1xf32, #tpu.memory_space<vmem>>, vector<3x1xf32>
    %43 = arith.mulf %41, %42 : vector<3x1xf32>
    %44 = vector.broadcast %32 : vector<3x1xf32> to vector<3x27xf32>
    %45 = arith.subf %25, %44 : vector<3x27xf32>
    %46 = vector.broadcast %43 : vector<3x1xf32> to vector<3x27xf32>
    %47 = arith.mulf %45, %46 : vector<3x27xf32>
    %c0_16 = arith.constant 0 : index
    %c0_17 = arith.constant 0 : index
    %48 = vector.load %arg4[%c0_16, %c0_17] : memref<3x1xf32, #tpu.memory_space<vmem>>, vector<3x1xf32>
    %49 = vector.broadcast %48 : vector<3x1xf32> to vector<3x27xf32>
    %50 = arith.addf %47, %49 : vector<3x27xf32>
    %cst_18 = arith.constant 0.000000e+00 : f32
    %51 = vector.broadcast %cst_18 : f32 to vector<3x27xf32>
    %52 = arith.maximumf %50, %51 : vector<3x27xf32>
    %53 = vector.extract_strided_slice %2 {offsets = [0, 0, 0], sizes = [1, 3, 1], strides = [1, 1, 1]} : vector<3x3x1xf32> to vector<1x3x1xf32>
    %54 = vector.shape_cast %53 : vector<1x3x1xf32> to vector<3x1xf32>
    %55 = vector.extract_strided_slice %52 {offsets = [0, 0], sizes = [1, 27], strides = [1, 1]} : vector<3x27xf32> to vector<1x27xf32>
    %56 = vector.broadcast %54 : vector<3x1xf32> to vector<3x27xf32>
    %57 = vector.broadcast %55 : vector<1x27xf32> to vector<3x27xf32>
    %58 = arith.mulf %56, %57 : vector<3x27xf32>
    %59 = vector.extract_strided_slice %2 {offsets = [1, 0, 0], sizes = [1, 3, 1], strides = [1, 1, 1]} : vector<3x3x1xf32> to vector<1x3x1xf32>
    %60 = vector.shape_cast %59 : vector<1x3x1xf32> to vector<3x1xf32>
    %61 = vector.extract_strided_slice %52 {offsets = [1, 0], sizes = [1, 27], strides = [1, 1]} : vector<3x27xf32> to vector<1x27xf32>
    %62 = vector.broadcast %60 : vector<3x1xf32> to vector<3x27xf32>
    %63 = vector.broadcast %61 : vector<1x27xf32> to vector<3x27xf32>
    %64 = arith.mulf %62, %63 : vector<3x27xf32>
    %65 = arith.addf %58, %64 : vector<3x27xf32>
    %66 = vector.extract_strided_slice %2 {offsets = [2, 0, 0], sizes = [1, 3, 1], strides = [1, 1, 1]} : vector<3x3x1xf32> to vector<1x3x1xf32>
    %67 = vector.shape_cast %66 : vector<1x3x1xf32> to vector<3x1xf32>
    %68 = vector.extract_strided_slice %52 {offsets = [2, 0], sizes = [1, 27], strides = [1, 1]} : vector<3x27xf32> to vector<1x27xf32>
    %69 = vector.broadcast %67 : vector<3x1xf32> to vector<3x27xf32>
    %70 = vector.broadcast %68 : vector<1x27xf32> to vector<3x27xf32>
    %71 = arith.mulf %69, %70 : vector<3x27xf32>
    %72 = arith.addf %65, %71 : vector<3x27xf32>
    %c0_19 = arith.constant 0 : index
    %c0_20 = arith.constant 0 : index
    %73 = vector.load %arg6[%c0_19, %c0_20] : memref<3x1xf32, #tpu.memory_space<vmem>>, vector<3x1xf32>
    %74 = vector.broadcast %73 : vector<3x1xf32> to vector<3x27xf32>
    %75 = arith.addf %72, %74 : vector<3x27xf32>
    %cst_21 = arith.constant 5.000000e-01 : f32
    %76 = vector.broadcast %cst_21 : f32 to vector<3x27xf32>
    %77 = arith.mulf %76, %75 : vector<3x27xf32>
    %78 = math.tanh %77 : vector<3x27xf32>
    %cst_22 = arith.constant 1.000000e+00 : f32
    %79 = vector.broadcast %cst_22 : f32 to vector<3x27xf32>
    %80 = arith.addf %78, %79 : vector<3x27xf32>
    %cst_23 = arith.constant 5.000000e-01 : f32
    %81 = vector.broadcast %cst_23 : f32 to vector<3x27xf32>
    %82 = arith.mulf %81, %80 : vector<3x27xf32>
    %c0_24 = arith.constant 0 : index
    %c0_25 = arith.constant 0 : index
    %83 = vector.load %arg7[%c0_24, %c0_25] : memref<3x27xf32, #tpu.memory_space<vmem>>, vector<3x27xf32>
    tpu.vector_store %arg7[%c0_24, %c0_25], %82 {strides = array<i32>} : memref<3x27xf32, #tpu.memory_space<vmem>>, vector<3x27xf32>,
    return
  }
}

</mosaic_0001>

<bundles_post_ra>
// kernel: tpu_custom_call.1
= control target key start
LH: loop header
LB: loop body
LE: loop exit
PB: predicated region body
PF: predicated region fallthrough
CT: control target
= control target key end

     0   :  { %v193_v2 = vmov 0   ;;  %s274_s0 = inlined_call_operand.vmem [shape: f32[3,27], index: 0, kind: input, shape index: {}]   ;;  %s275_s1 = inlined_call_operand.vmem [shape: f32[3,3,1], index: 1, kind: input, shape index: {}]   ;;  %s276_s2 = inlined_call_operand.vmem [shape: f32[3,1], index: 2, kind: input, shape index: {}]   ;;  %s277_s3 = inlined_call_operand.vmem [shape: f32[3,1], index: 3, kind: input, shape index: {}]   ;;  %s278_s4 = inlined_call_operand.vmem [shape: f32[3,1], index: 4, kind: input, shape index: {}]   ;;  %s279_s5 = inlined_call_operand.vmem [shape: f32[3,3,1], index: 5, kind: input, shape index: {}]   ;;  %s280_s6 = inlined_call_operand.vmem [shape: f32[3,1], index: 6, kind: input, shape index: {}]   ;;  %s281_s7 = inlined_call_operand.hbm [shape: f32[3,27], index: 7, kind: output, shape index: {}]  }
   0x1   :  { %v28_v0 = vld [vmem:[%s275_s1] sm:$0x7]  ;;  %v30_v1 = vld [vmem:[%s275_s1 + $0x8] sm:$0x7]  ;;  %165 = vset.pattern.permute.xlu0 %v193_v2  ;;  %166 = vset.pattern.permute.xlu1 %v193_v2 }
   0x2   :  { %36 = vperm.xlu0 %165, %v28_v0   ;;  %57 = vperm.xlu1 %166, %v30_v1  }
   0x3   :  { %12 = vsyncpa [#allocation3], 0  ;;  %v29_v3 = vld [vmem:[%s275_s1 + $0x4] sm:$0x7]  ;;  %v66_v4 = vld [vmem:[%s276_s2] sm:$0x7]  ;;  %v39_v5 = vlaneseq }
   0x4   :  { %v27_v10 = vld [vmem:[%s274_s0] sm:$0x7]  ;;  %vm73_vm0 = vcmask 215040   ;;  %v32_v28 = vld [vmem:[%s279_s5 + $0x4] sm:$0x7] }
   0x5   :  { %v40_v6 = vshrl.u32 %v39_v5, 7  ;;  %v97_v27 = vld [vmem:[%s278_s4] sm:$0x7]  ;;  %v33_v42 = vld [vmem:[%s279_s5 + $0x8] sm:$0x7] }
   0x6   :  { %46 = vperm.xlu0 %165, %v29_v3   ;;  %69 = vperm.xlu1 %166, %v66_v4   ;;  %v137_v29 = vld [vmem:[%s280_s6] sm:$0x7] }
   0x7   :  { %v41_v7 = vsub.s32 0, %v40_v6  ;;  %v62_v8 = vsub.s32 2, %v40_v6  ;;  %v51_v9 = vsub.s32 1, %v40_v6  ;;  %v88_v38 = vld [vmem:[%s277_s3] sm:$0x7]  ;;  %s194_s3 = smov [#allocation2]  }
   0x8   :  { %v31_v41 = vld [vmem:[%s279_s5] sm:$0x7]  ;;  %s155_s5 = sshll.u32 %s194_s3, 4  ;;  %s156_s5 = int_to_ptr.vmem [resolvable:$true] %s155_s5 }
   0x9   :  { %v42_v12 = vrot.slane %v27_v10, %v41_v7  ;;  %v63_v13 = vrot.slane %v27_v10, %v62_v8  ;;  %v52_v14 = vrot.slane %v27_v10, %v51_v9  ;;  %s171_s18 = scalar_lea.vmem %s156_s5, 64  ;;  %p176_p1 = scmp.lt.s32.totalorder %s156_s5, %s156_s5 }
   0xa   :  { %p172_p0 = scmp.ne.s32.totalorder %s156_s5, %s171_s18  ;;  %p177_p2 = scmp.lt.s32.totalorder %s171_s18, %s171_s18 }
   0xc   :  { %p178_p3 = por %p177_p2, %p176_p1 }
   0xe   :  { %p179_p4 = pnand %p178_p3, %p172_p0 }
  0x7d   :  { %v37_v11 = vpop.permute.xlu0 %36  ;;  %v58_v15 = vpop.permute.xlu1 %57 }
  0x7e   :  { %v43_v17 = vmul.f32 %v42_v12, %v37_v11  ;;  %v64_v18 = vmul.f32 %v63_v13, %v58_v15 }
  0x81   :  { %v47_v16 = vpop.permute.xlu0 %46  ;;  %v70_v22 = vpop.permute.xlu1 %69 }
  0x82   :  { %v53_v19 = vmul.f32 %v52_v14, %v47_v16 }
  0x84   :  { %v54_v20 = vadd.f32 %v53_v19, %v43_v17 }
  0x86   :  { %v65_v21 = vadd.f32 %v64_v18, %v54_v20 }
  0x88   :  { %v72_v23 = vadd.f32 %v70_v22, %v65_v21 }
  0x8a   :  { %v74_v24 = vsel %vm73_vm0, %v72_v23, 0.0  ;;  %v77_v25 = vmul.f32 %v72_v23, %v72_v23 }
  0x8b   :  { %75 = vadd.xlane.f32.xlu0 %v74_v24 }
  0x8c   :  { %v78_v26 = vsel %vm73_vm0, %v77_v25, 0.0 }
  0x8d   :  { %79 = vadd.xlane.f32.xlu1 %v78_v26 }
  0x9e   :  { %100 = vperm.xlu1 %166, %v97_v27  }
  0xa2   :  { %117 = vperm.xlu1 %166, %v32_v28  }
  0xa6   :  { %140 = vperm.xlu1 %166, %v137_v29  }
 0x114   :  { %v76_v30 = vpop.xlane.xlu0 %75 }
 0x115   :  { %v81_v31 = vmul.f32 0.037037037, %v76_v30 }
 0x116   :  { %v80_v32 = vpop.xlane.xlu1 %79 }
 0x117   :  { %v83_v33 = vmul.f32 %v81_v31, %v81_v31  ;;  %v82_v34 = vmul.f32 0.037037037, %v80_v32  ;;  %v90_v43 = vsub.f32 %v72_v23, %v81_v31 }
 0x119   :  { %v84_v35 = vsub.f32 %v82_v34, %v83_v33 }
 0x11a   :  { %v101_v46 = vpop.permute.xlu1 %100 }
 0x11b   :  { %v85_v36 = vmax.f32 %v84_v35, 0.0 }
 0x11d   :  { %v86_v37 = vadd.f32 1e-05, %v85_v36 }
 0x11e   :  { %v118_v53 = vpop.permute.xlu1 %117 }
 0x11f   :  { %167 = vrsqrt.f32 %v86_v37 }
 0x122   :  { %v141_v60 = vpop.permute.xlu1 %140 }
 0x12c   :  { %v168_v39 = vpop.eup %167 }
 0x12d   :  { %v89_v40 = vmul.f32 %v168_v39, %v88_v38 }
 0x12f   :  { %93 = vperm.xlu0 %165, %v89_v40  }
 0x133   :  { %107 = vperm.xlu0 %165, %v31_v41  }
 0x137   :  { %128 = vperm.xlu0 %165, %v33_v42  }
 0x1aa   :  { %v94_v44 = vpop.permute.xlu0 %93 }
 0x1ab   :  { %v96_v45 = vmul.f32 %v94_v44, %v90_v43 }
 0x1ad   :  { %v103_v47 = vadd.f32 %v101_v46, %v96_v45 }
 0x1ae   :  { %v108_v48 = vpop.permute.xlu0 %107 }
 0x1af   :  { %v104_v49 = vmax.f32 %v103_v47, 0.0 }
 0x1b1   :  { %v113_v50 = vrot.slane %v104_v49, %v41_v7  ;;  %v123_v51 = vrot.slane %v104_v49, %v51_v9  ;;  %v134_v52 = vrot.slane %v104_v49, %v62_v8 }
 0x1b2   :  { %v129_v54 = vpop.permute.xlu0 %128 }
 0x1b3   :  { %v124_v55 = vmul.f32 %v123_v51, %v118_v53  ;;  %v114_v56 = vmul.f32 %v113_v50, %v108_v48  ;;  %v135_v58 = vmul.f32 %v134_v52, %v129_v54 }
 0x1b5   :  { %v125_v57 = vadd.f32 %v124_v55, %v114_v56 }
 0x1b7   :  { %v136_v59 = vadd.f32 %v135_v58, %v125_v57 }
 0x1b9   :  { %v143_v61 = vadd.f32 %v141_v60, %v136_v59 }
 0x1bb   :  { %v144_v62 = vmul.f32 0.5, %v143_v61 }
 0x1bd   :  { %169 = vtanh.f32 %v144_v62 }
 0x1ca   :  { %v170_v63 = vpop.eup %169 }
 0x1cb   :  { %v146_v0 = vadd.f32 1.0, %v170_v63 }
 0x1cd   :  { %v147_v1 = vmul.f32 0.5, %v146_v0 }
 0x1cf   :  { %148 = vst.msk [vmem:[#allocation2] sm:$0x7] %vm73_vm0, %v147_v1 }
 0x1d0   :  { %182 = shalt.err (!%p179_p4)
}
 0x1d1   :  { %158 = dma.vmem_to_hbm [thread:$0]  %s156_s5, 64, %s281_s7, [#allocation3]  }
 0x1d2   :  { %191 = dma.done.wait [#allocation3], 64  }
 0x1d3   :  { %192 = vsyncadd [#allocation3], 4294967232 }
 0x1d4   :  { %162 = vsyncpa [#allocation3], 1 }

</bundles_post_ra>
